<compile_context>
chip_gen: v5e
topology: v5e:2x2
jax: 0.10.0
libtpu: 0.0.40
codegen_flags: <defaults>
</compile_context>

<pallas_src>
import functools

import jax
import jax.numpy as jnp
from jax.experimental import pallas as pl
from jax.experimental.pallas import tpu as pltpu


_MAX_ROW_TILE = 1024


def _ce_kernel(pred_ref, tgt_ref, loss_ref):
    # pred_ref: (R, C) native float; tgt_ref: (R, 1) int32; loss_ref: (1, 1, R) f32
    x = pred_ref[...].astype(jnp.float32)                        # (R, C)
    t = tgt_ref[...]                                             # (R, 1)

    # Numerically-stable softmax pieces; only the target column is needed.
    m = jnp.max(x, axis=1, keepdims=True)                        # (R, 1)
    e = jnp.exp(x - m)                                           # (R, C)  only full-width transcendental
    s = jnp.sum(e, axis=1, keepdims=True)                        # (R, 1)

    cols = jax.lax.broadcasted_iota(jnp.int32, x.shape, 1)       # (R, C)
    e_t = jnp.sum(jnp.where(cols == t, e, 0.0),
                  axis=1, keepdims=True)                         # (R, 1)

    # softmax[target] = e_t / s ; keep the reference's `+1e-10` before the log.
    p_t = e_t * pl.reciprocal(s, approx=False)                   # (R, 1)
    loss = -jnp.log(p_t + 1e-10)                                 # (R, 1), per-row log only

    # Lane-dense store: (R, 1) column -> (1, 1, R) row slab (XLU relayout).
    loss_ref[...] = loss.reshape(loss_ref.shape)


def _vmem_limit_bytes():
    cap = 64 * 1024 * 1024  # conservative default (v7x per-TensorCore VMEM)
    try:
        info = pltpu.get_tpu_info()
        cap = int(getattr(info, "vmem_capacity_bytes", cap)) or cap
    except Exception:
        pass
    # Leave headroom below physical capacity; never ask for more than ~100 MiB.
    return int(min(cap * 3 // 4, 100 * 1024 * 1024))


def _choose_row_tile(N, C, itemsize, budget_bytes):
    """Pick (row_tile, pad_rows) so 2x double-buffered input + f32 working set fits."""
    align = 8 if itemsize >= 4 else (16 if itemsize == 2 else 32)
    # 2 pipeline buffers of the input tile + ~2 full f32 working arrays per row.
    per_row = C * (2 * itemsize + 8) + 64
    max_rows = max(1, budget_bytes // per_row)
    max_rows = min(max_rows, _MAX_ROW_TILE, N)

    if N <= max_rows:
        return N, 0                       # single block covering all rows

    r_cap = (max_rows // align) * align
    if r_cap >= align:
        r = r_cap
        while r >= align:
            # Prefer an exact divisor of N (no padding of the big array),
            # as long as it is not absurdly smaller than the VMEM budget.
            if N % r == 0 and r * 8 >= r_cap:
                return r, 0
            r -= align
        return r_cap, (-N) % r_cap        # pad a few rows rather than tile tiny

    # Extremely large C: fall back to the smallest aligned tile.
    # TODO(synk): add a second 'arbitrary' grid axis over C (online softmax)
    # for vocabularies too large for even an 8-row tile in VMEM.
    return align, (-N) % align


@functools.partial(jax.jit, static_argnames=("row_tile", "pad", "vmem_limit"))
def _ce_call(pred2d, tgt2d, *, row_tile, pad, vmem_limit):
    N, C = pred2d.shape
    if pad:
        pred2d = jnp.pad(pred2d, ((0, pad), (0, 0)))
        tgt2d = jnp.pad(tgt2d, ((0, pad), (0, 0)))
    Np = N + pad
    num_tiles = Np // row_tile

    loss3d = pl.pallas_call(
        _ce_kernel,
        out_shape=jax.ShapeDtypeStruct((num_tiles, 1, row_tile), jnp.float32),
        grid_spec=pltpu.PrefetchScalarGridSpec(
            num_scalar_prefetch=0,
            grid=(num_tiles,),
            in_specs=[
                pl.BlockSpec((row_tile, C), lambda i: (i, 0)),
                pl.BlockSpec((row_tile, 1), lambda i: (i, 0)),
            ],
            out_specs=pl.BlockSpec((1, 1, row_tile), lambda i: (i, 0, 0)),
        ),
        compiler_params=pltpu.CompilerParams(
            dimension_semantics=("parallel",),
            vmem_limit_bytes=vmem_limit,
        ),
    )(pred2d, tgt2d)

    return loss3d.reshape(Np)[:N]


def custom_cross_entropy_loss(predictions, targets):
    """predictions: (B, T, C) float; targets: (B, T) int -> loss: (B*T,) float32."""
    B, T, C = predictions.shape
    N = B * T

    pred2d = predictions.reshape(N, C)           # keep native dtype (bf16 stays bf16)
    tgt2d = targets.reshape(N, 1).astype(jnp.int32)

    vmem_limit = _vmem_limit_bytes()
    row_tile, pad = _choose_row_tile(N, C, pred2d.dtype.itemsize, vmem_limit // 2)
    return _ce_call(pred2d, tgt2d, row_tile=row_tile, pad=pad, vmem_limit=vmem_limit)


def _reference(predictions, targets):
    B, T, C = predictions.shape
    p = predictions.reshape(B * T, C).astype(jnp.float32)
    t = targets.reshape(-1)
    sm = jax.nn.softmax(p, axis=1)
    oh = jax.nn.one_hot(t, C, dtype=jnp.float32)
    return -jnp.sum(oh * jnp.log(sm + 1e-10), axis=1)


if __name__ == "__main__":
    key = jax.random.PRNGKey(0)
    k1, k2 = jax.random.split(key)

    B, T, C = 2, 8, 32  # small shapes consistent with (B, T, C) / (B, T)
    predictions = jax.random.normal(k1, (B, T, C), dtype=jnp.float32)
    targets = jax.random.randint(k2, (B, T), 0, C, dtype=jnp.int32)

    loss = custom_cross_entropy_loss(predictions, targets)
    loss = jax.block_until_ready(loss)

    ref = _reference(predictions, targets)
    assert loss.shape == (B * T,)
    assert jnp.allclose(loss, ref, atol=1e-5, rtol=1e-5), (loss, ref)

    print("KERNEL_OK")
</pallas_src>

<mosaic_0001>
module attributes {stable_mosaic.version = 11 : i64} {
  func.func @_ce_kernel(%arg0: i32, %arg1: memref<16x32xf32, #tpu.memory_space<vmem>>, %arg2: memref<16x1xi32, #tpu.memory_space<vmem>>, %arg3: memref<1x1x16xf32, #tpu.memory_space<vmem>>) attributes {dimension_semantics = [#tpu.dimension_semantics<parallel>], iteration_bounds = array<i64: 1>, scalar_prefetch = 0 : i64, scratch_operands = 0 : i64, tpu.core_type = #tpu.core_type<tc>, window_params = [{transform_indices = @transform_0, window_bounds = array<i64: 16, 32>}, {transform_indices = @transform_1, window_bounds = array<i64: 16, 1>}, {transform_indices = @transform_2, window_bounds = array<i64: 1, 1, 16>}]} {
    %c0 = arith.constant 0 : index
    %c0_0 = arith.constant 0 : index
    %0 = vector.load %arg1[%c0, %c0_0] : memref<16x32xf32, #tpu.memory_space<vmem>>, vector<16x32xf32>
    %c0_1 = arith.constant 0 : index
    %c0_2 = arith.constant 0 : index
    %1 = vector.load %arg2[%c0_1, %c0_2] : memref<16x1xi32, #tpu.memory_space<vmem>>, vector<16x1xi32>
    %cst = arith.constant dense<0xFF800000> : vector<16xf32>
    %2 = vector.multi_reduction <maximumf>, %0, %cst [1] : vector<16x32xf32> to vector<16xf32>
    %3 = vector.shape_cast %2 : vector<16xf32> to vector<16x1xf32>
    %4 = vector.broadcast %3 : vector<16x1xf32> to vector<16x32xf32>
    %5 = arith.subf %0, %4 : vector<16x32xf32>
    %6 = math.exp %5 : vector<16x32xf32>
    %cst_3 = arith.constant dense<0.000000e+00> : vector<16xf32>
    %7 = vector.multi_reduction <add>, %6, %cst_3 [1] : vector<16x32xf32> to vector<16xf32>
    %8 = vector.shape_cast %7 : vector<16xf32> to vector<16x1xf32>
    %9 = tpu.iota {dimensions = array<i32: 1>} : vector<16x32xi32>
    %10 = vector.broadcast %1 : vector<16x1xi32> to vector<16x32xi32>
    %11 = arith.cmpi eq, %9, %10 : vector<16x32xi32>
    %cst_4 = arith.constant 0.000000e+00 : f32
    %12 = vector.broadcast %cst_4 : f32 to vector<16x32xf32>
    %13 = arith.select %11, %6, %12 : vector<16x32xi1>, vector<16x32xf32>
    %cst_5 = arith.constant dense<0.000000e+00> : vector<16xf32>
    %14 = vector.multi_reduction <add>, %13, %cst_5 [1] : vector<16x32xf32> to vector<16xf32>
    %15 = vector.shape_cast %14 : vector<16xf32> to vector<16x1xf32>
    %16 = tpu.reciprocal %8 : vector<16x1xf32> -> vector<16x1xf32>
    %17 = arith.mulf %15, %16 : vector<16x1xf32>
    %cst_6 = arith.constant 1.000000e-10 : f32
    %18 = vector.broadcast %cst_6 : f32 to vector<16x1xf32>
    %19 = arith.addf %17, %18 : vector<16x1xf32>
    %20 = math.log %19 : vector<16x1xf32>
    %cst_7 = arith.constant 0.000000e+00 : f32
    %21 = vector.broadcast %cst_7 : f32 to vector<16x1xf32>
    %22 = arith.subf %21, %20 : vector<16x1xf32>
    %23 = vector.shape_cast %22 : vector<16x1xf32> to vector<1x1x16xf32>
    %c0_8 = arith.constant 0 : index
    %c0_9 = arith.constant 0 : index
    %c0_10 = arith.constant 0 : index
    %24 = vector.load %arg3[%c0_8, %c0_9, %c0_10] : memref<1x1x16xf32, #tpu.memory_space<vmem>>, vector<1x1x16xf32>
    tpu.vector_store %arg3[%c0_8, %c0_9, %c0_10], %23 {strides = array<i32>} : memref<1x1x16xf32, #tpu.memory_space<vmem>>, vector<1x1x16xf32>,
    return
  }
  func.func @transform_0(%arg0: i32) -> (i32, i32) {
    %c0_i32 = arith.constant 0 : i32
    %c0_i32_0 = arith.constant 0 : i32
    return %arg0, %c0_i32 : i32, i32
  }
  func.func @transform_1(%arg0: i32) -> (i32, i32) {
    %c0_i32 = arith.constant 0 : i32
    %c0_i32_0 = arith.constant 0 : i32
    return %arg0, %c0_i32 : i32, i32
  }
  func.func @transform_2(%arg0: i32) -> (i32, i32, i32) {
    %c0_i32 = arith.constant 0 : i32
    %c0_i32_0 = arith.constant 0 : i32
    %c0_i32_1 = arith.constant 0 : i32
    return %arg0, %c0_i32, %c0_i32_0 : i32, i32, i32
  }
}

</mosaic_0001>

<bundles_post_ra>
// kernel: _ce_call.1
= control target key start
LH: loop header
LB: loop body
LE: loop exit
PB: predicated region body
PF: predicated region fallthrough
CT: control target
= control target key end

     0   :  { %vm16_vm0 = vcmask 261120   ;;  %v159_v3 = vmov 0   ;;  %s203_s0 = inlined_call_operand.vmem [shape: f32[16,32], index: 0, kind: input, shape index: {}]   ;;  %s204_s1 = inlined_call_operand.vmem [shape: s32[16,1], index: 1, kind: input, shape index: {}]   ;;  %s205_s2 = inlined_call_operand.hbm [shape: f32[1,1,16], index: 2, kind: output, shape index: {}]  }
   0x1   :  { %v12_v0 = vld [vmem:[%s203_s0] sm:$0xff]  ;;  %119 = vset.pattern.permute.xlu1 %v159_v3  ;;  %120 = vset.pattern.permute.xlu0 %v159_v3 }
   0x2   :  { %v14_v1 = vld [vmem:[%s204_s1] sm:$0xff]  ;;  %v17_v2 = vsel %vm16_vm0, %v12_v0, -inf }
   0x3   :  { %7 = vsyncpa [#allocation3], 0  ;;  %18 = vmax.xlane.f32.xlu0 %v17_v2  ;;  %38 = vperm.xlu1 %119, %v14_v1   ;;  %v13_v4 = vld [vmem:[%s203_s0 + $0x8] sm:$0xff]  ;;  %v35_v9 = vlaneseq  ;;  %s160_s0 = smov [#allocation2]   ;;  %s108_s19 = sshll.u32 %s205_s2, 4  ;;  %vm96_vm11 = vcmask 130112   ;;  %s109_s19 = int_to_ptr.hbm [resolvable:$true] %s108_s19 }
   0x4   :  { %v20_v5 = vsel %vm16_vm0, %v13_v4, -inf  ;;  %v15_v6 = vld [vmem:[%s204_s1 + $0x8] sm:$0xff]  ;;  %s106_s1 = sshll.u32 %s160_s0, 4  ;;  %vm99_vm12 = vcmask 122880   ;;  %s107_s1 = int_to_ptr.vmem [resolvable:$true] %s106_s1 }
   0x5   :  { %v190_v12 = vand.u32 127, %v35_v9 }
   0x7   :  { %v94_v57 = vadd.s32 4294967288, %v190_v12 }
   0xb   :  { %21 = vmax.xlane.f32.xlu0 %v20_v5  ;;  %41 = vperm.xlu1 %119, %v15_v6  }
  0x75   :  { %v39_v11 = vpop.permute.xlu1 %38 }
  0x76   :  { %v19_v7 = vpop.xlane.xlu0 %18  ;;  %vm43_vm1 = vcmp.eq.s32.totalorder %v190_v12, %v39_v11 }
  0x77   :  { %v23_v8 = vsub.f32 %v12_v0, %v19_v7 }
  0x79   :  { %v25_v10 = vmul.f32 1.442695, %v23_v8 }
  0x7b   :  { %121 = vpow2.f32 %v25_v10 }
  0x7d   :  { %v42_v20 = vpop.permute.xlu1 %41 }
  0x7e   :  { %v22_v13 = vpop.xlane.xlu0 %21  ;;  %vm44_vm2 = vcmp.eq.s32.totalorder %v190_v12, %v42_v20 }
  0x7f   :  { %v24_v14 = vsub.f32 %v13_v4, %v22_v13 }
  0x81   :  { %v122_v15 = vpop.eup %121  ;;  %v27_v16 = vmul.f32 1.442695, %v24_v14 }
  0x82   :  { %v29_v17 = vsel %vm16_vm0, %v122_v15, 0.0  ;;  %v45_v18 = vsel %vm43_vm1, %v122_v15, 0.0 }
  0x83   :  { %123 = vpow2.f32 %v27_v16  ;;  %30 = vadd.xlane.f32.xlu2 %v29_v17  ;;  %v47_v19 = vsel %vm16_vm0, %v45_v18, 0.0 }
  0x84   :  { %48 = vadd.xlane.f32.xlu0 %v47_v19 }
  0x89   :  { %v124_v21 = vpop.eup %123 }
  0x8a   :  { %v32_v22 = vsel %vm16_vm0, %v124_v21, 0.0  ;;  %v46_v23 = vsel %vm44_vm2, %v124_v21, 0.0 }
  0x8b   :  { %33 = vadd.xlane.f32.xlu2 %v32_v22  ;;  %v50_v24 = vsel %vm16_vm0, %v46_v23, 0.0 }
  0x8c   :  { %51 = vadd.xlane.f32.xlu1 %v50_v24 }
  0xf6   :  { %v31_v25 = vpop.xlane.xlu2 %30 }
  0xf7   :  { %125 = vrcp.f32 %v31_v25  ;;  %v64_v30 = vand.u32 2147483648, %v31_v25  ;;  %v62_v32 = vand.u32 2147483647, %v31_v25  ;;  %vm58_vm4 = vweird.f32 %v31_v25  ;;  %v49_v39 = vpop.xlane.xlu0 %48 }
  0xf9   :  { %v65_v35 = vor.u32 1.1754944e-38, %v64_v30  ;;  %vm63_vm6 = vcmp.eq.f32.partialorder %v62_v32, 8.507059e+37 }
  0xfd   :  { %v126_v26 = vpop.eup %125 }
  0xfe   :  { %v54_v27 = vmul.f32 %v126_v26, %v31_v25  ;;  %v34_v28 = vpop.xlane.xlu2 %33  ;;  %vm59_vm3 = vweird.f32 %v126_v26 }
  0xff   :  { %127 = vrcp.f32 %v34_v28  ;;  %vm60_vm5 = vmor %vm58_vm4, %vm59_vm3  ;;  %v78_v42 = vand.u32 2147483648, %v34_v28  ;;  %v76_v45 = vand.u32 2147483647, %v34_v28  ;;  %vm72_vm8 = vweird.f32 %v34_v28  ;;  %v52_v49 = vpop.xlane.xlu1 %51 }
 0x100   :  { %v55_v29 = vsub.f32 1.0, %v54_v27 }
 0x101   :  { %v79_v47 = vor.u32 1.1754944e-38, %v78_v42  ;;  %vm77_vm10 = vcmp.eq.f32.partialorder %v76_v45, 8.507059e+37 }
 0x102   :  { %v56_v31 = vmul.f32 %v126_v26, %v55_v29 }
 0x104   :  { %v57_v33 = vadd.f32 %v126_v26, %v56_v31 }
 0x105   :  { %v128_v34 = vpop.eup %127 }
 0x106   :  { %v61_v36 = vsel %vm60_vm5, %v126_v26, %v57_v33  ;;  %v68_v37 = vmul.f32 %v128_v34, %v34_v28  ;;  %vm73_vm7 = vweird.f32 %v128_v34 }
 0x107   :  { %v66_v38 = vsel %vm63_vm6, %v65_v35, %v61_v36  ;;  %vm74_vm9 = vmor %vm72_vm8, %vm73_vm7 }
 0x108   :  { %v81_v40 = vmul.f32 %v66_v38, %v49_v39  ;;  %v69_v41 = vsub.f32 1.0, %v68_v37 }
 0x10a   :  { %v83_v43 = vadd.f32 1e-10, %v81_v40  ;;  %v70_v44 = vmul.f32 %v128_v34, %v69_v41 }
 0x10c   :  { %v71_v46 = vadd.f32 %v128_v34, %v70_v44  ;;  %129 = vlog2.f32 %v83_v43 }
 0x10e   :  { %v75_v48 = vsel %vm74_vm9, %v128_v34, %v71_v46 }
 0x10f   :  { %v80_v50 = vsel %vm77_vm10, %v79_v47, %v75_v48 }
 0x110   :  { %v82_v51 = vmul.f32 %v80_v50, %v52_v49 }
 0x112   :  { %v84_v52 = vadd.f32 1e-10, %v82_v51  ;;  %v130_v53 = vpop.eup %129 }
 0x113   :  { %v86_v54 = vmul.f32 0.6931472, %v130_v53 }
 0x114   :  { %131 = vlog2.f32 %v84_v52 }
 0x115   :  { %v89_v56 = vsub.f32 0.0, %v86_v54 }
 0x117   :  { %v93_v60 = vperm.slane %v89_v56, %v190_v12 }
 0x11a   :  { %v132_v55 = vpop.eup %131 }
 0x11b   :  { %v88_v58 = vmul.f32 0.6931472, %v132_v55 }
 0x11d   :  { %v90_v59 = vsub.f32 0.0, %v88_v58 }
 0x11f   :  { %v95_v61 = vperm.slane %v90_v59, %v94_v57 }
 0x121   :  { %v97_v62 = vsel %vm96_vm11, %v95_v61, %v93_v60 }
 0x122   :  { %100 = vst.msk [vmem:[#allocation2] sm:$0x1] %vm99_vm12, %v97_v62 }
 0x123   :  { %111 = dma.vmem_to_hbm [thread:$0]  %s107_s1, 16, %s109_s19, [#allocation3]  }
 0x124   :  { %157 = dma.done.wait [#allocation3], 16  }
 0x125   :  { %158 = vsyncadd [#allocation3], 4294967280 }
 0x126   :  { %116 = vsyncpa [#allocation3], 1 }

</bundles_post_ra>
